<compile_context>
chip_gen: v7x
topology: tpu7x:2x2x1
jax: 0.10.0
libtpu: 0.0.40
codegen_flags: <defaults>
</compile_context>

<pallas_src>
import math
import functools

import jax
import jax.numpy as jnp
from jax import lax
from jax.experimental import pallas as pl
from jax.experimental.pallas import tpu as pltpu


def _itemsize(dt):
    return jnp.dtype(dt).itemsize


def _vmem_limit(total_block_bytes):
    # 2x for double buffering + 4 MiB slack; floor at the 32 MiB default and
    # cap below v5e/v6e physical VMEM (tiles are sized so realistic configs
    # also stay inside v7x's 64 MiB).
    return int(min(100 * (1 << 20),
                   max(32 * (1 << 20), 2 * total_block_bytes + (4 << 20))))


# ---------------------------------------------------------------------------
# Linear projection kernel:  y = x @ w_t + b      (w_t already (in_f, out_f))
# ---------------------------------------------------------------------------

def _linear_kernel(x_ref, w_ref, b_ref, o_ref):
    acc = jnp.dot(x_ref[...], w_ref[...], preferred_element_type=jnp.float32)
    o_ref[...] = (acc + b_ref[...]).astype(o_ref.dtype)


def linear(x, w_t, b, *, row_tile=256, col_tile=512):
    """x: (N, in_f); w_t: (in_f, out_f) pre-transposed; b: (out_f,) f32."""
    n, in_f = x.shape
    out_f = w_t.shape[1]
    tm = n if n <= row_tile else row_tile
    tn = out_f if out_f <= col_tile else col_tile
    # Columns on the OUTER grid axis so the weight column tile stays resident
    # across the inner row sweep (no per-step weight re-DMA).
    grid = (pl.cdiv(out_f, tn), pl.cdiv(n, tm))
    blk_bytes = ((tm * in_f + in_f * tn + tm * tn) * _itemsize(x.dtype)
                 + tn * 4)
    return pl.pallas_call(
        _linear_kernel,
        out_shape=jax.ShapeDtypeStruct((n, out_f), x.dtype),
        grid_spec=pltpu.PrefetchScalarGridSpec(
            num_scalar_prefetch=0,
            grid=grid,
            in_specs=[
                pl.BlockSpec((tm, in_f), lambda j, i: (i, 0)),
                pl.BlockSpec((in_f, tn), lambda j, i: (0, j)),   # resident per col sweep
                pl.BlockSpec((1, tn), lambda j, i: (0, j)),
            ],
            out_specs=pl.BlockSpec((tm, tn), lambda j, i: (i, j)),
        ),
        compiler_params=pltpu.CompilerParams(
            dimension_semantics=("parallel", "parallel"),
            vmem_limit_bytes=_vmem_limit(blk_bytes)),
    )(x, w_t, b.reshape(1, out_f).astype(jnp.float32))


# ---------------------------------------------------------------------------
# Attention + fused output-projection kernel.
# One (batch, tgt-tile) per grid step, all heads, lane-dense E slabs.
# ---------------------------------------------------------------------------

def _make_attn_kernel(num_heads, head_dim, masked):
    def kernel(*refs):
        if masked:
            q_ref, k_ref, v_ref, kpm_ref, wo_ref, bo_ref, o_ref, acc_ref = refs
        else:
            q_ref, k_ref, v_ref, wo_ref, bo_ref, o_ref, acc_ref = refs
            kpm_ref = None
        q = q_ref[...]            # (tq, E) -- scale already folded into W_q
        k = k_ref[...]            # (S, E)
        v = v_ref[...]            # (S, E)
        if masked:
            # Tiny (1,S) pad mask -> additive bias; -1e30 (finite) so fully
            # padded rows stay finite. Broadcast hoisted ONCE, reused per head.
            bias = jnp.where(kpm_ref[0] > 0, jnp.float32(-1e30),
                             jnp.float32(0.0))                     # (1, S)
            bias = jnp.broadcast_to(bias, (q.shape[0], k.shape[0]))  # (tq, S)

        # TODO(synk): flash-style S-blocking (online softmax, extra
        # "arbitrary" grid axis) for very long src_len on v7x's 64 MiB VMEM.
        # TODO(synk): head-on-sublane layout to fill the 256-wide MXU when
        # head_dim << 128 (current per-head contraction depth is head_dim).
        for h in range(num_heads):            # static unroll over heads
            sl = slice(h * head_dim, (h + 1) * head_dim)
            # Contract on head_dim of both operands (no in-VMEM K transpose).
            s = lax.dot_general(q[:, sl], k[:, sl], (((1,), (1,)), ((), ())),
                                preferred_element_type=jnp.float32)
            if masked:
                s = s + bias
            m = jnp.max(s, axis=-1, keepdims=True)
            e = jnp.exp(s - m)                              # f32 softmax (v5e-safe)
            p = e * pl.reciprocal(jnp.sum(e, axis=-1, keepdims=True),
                                  approx=True)
            # Direct per-head store into the (tq, E) scratch slab.
            acc_ref[:, sl] = jnp.dot(p.astype(v.dtype), v[:, sl],
                                     preferred_element_type=jnp.float32
                                     ).astype(acc_ref.dtype)

        # Fused output projection epilogue: (tq,E) @ (E,E) + b, resident weight.
        out = jnp.dot(acc_ref[...], wo_ref[...],
                      preferred_element_type=jnp.float32)
        o_ref[...] = (out + bo_ref[...]).astype(o_ref.dtype)
    return kernel


def attention_outproj(q_arr, k_arr, v_arr, kpm3, out_wt, out_b, *,
                      bsz, tgt_len, src_len, num_heads, head_dim,
                      q_cols, q_off, k_cols, k_off, v_cols, v_off,
                      out_dtype, acc_dtype, tq_tile=256):
    """q_arr: (tgt_len, bsz*q_cols*E); k_arr/v_arr: (src_len, bsz*{k,v}_cols*E).
    Per-batch slab b sits at column block {q,k,v}_cols*b + {q,k,v}_off (width E).
    Returns (tgt_len, bsz*E) with the output projection already applied."""
    e = num_heads * head_dim
    tq = tgt_len if tgt_len <= tq_tile else tq_tile
    n_t = pl.cdiv(tgt_len, tq)
    masked = kpm3 is not None
    kern = _make_attn_kernel(num_heads, head_dim, masked)

    in_specs = [
        pl.BlockSpec((tq, e), lambda b, t: (t, q_cols * b + q_off)),
        pl.BlockSpec((src_len, e), lambda b, t: (0, k_cols * b + k_off)),
        pl.BlockSpec((src_len, e), lambda b, t: (0, v_cols * b + v_off)),
    ]
    args = [q_arr, k_arr, v_arr]
    if masked:
        in_specs.append(pl.BlockSpec((1, 1, src_len), lambda b, t: (b, 0, 0)))
        args.append(kpm3)
    in_specs += [
        pl.BlockSpec((e, e), lambda b, t: (0, 0)),   # resident out-proj weight
        pl.BlockSpec((1, e), lambda b, t: (0, 0)),   # resident out-proj bias
    ]
    args += [out_wt, out_b.reshape(1, e).astype(jnp.float32)]

    isz = _itemsize(q_arr.dtype)
    blk_bytes = ((tq * e + 2 * src_len * e + e * e) * isz
                 + tq * e * _itemsize(out_dtype)
                 + tq * e * _itemsize(acc_dtype)
                 + src_len * 4 + e * 4)

    return pl.pallas_call(
        kern,
        out_shape=jax.ShapeDtypeStruct((tgt_len, bsz * e), out_dtype),
        grid_spec=pltpu.PrefetchScalarGridSpec(
            num_scalar_prefetch=0,
            grid=(bsz, n_t),
            in_specs=in_specs,
            out_specs=pl.BlockSpec((tq, e), lambda b, t: (t, b)),
            scratch_shapes=[pltpu.VMEM((tq, e), acc_dtype)],
        ),
        compiler_params=pltpu.CompilerParams(
            dimension_semantics=("parallel", "parallel"),
            vmem_limit_bytes=_vmem_limit(blk_bytes)),
    )(*args)


# ---------------------------------------------------------------------------
# MultiheadAttention forward (fused-MHA semantics of multi_attn)
# ---------------------------------------------------------------------------

class MultiheadAttentionPallas:
    def __init__(self, embed_dim, num_heads, key, dropout=0.0, bias=True):
        assert embed_dim % num_heads == 0
        if embed_dim % 128 != 0:
            raise ValueError("embed_dim must be a multiple of 128 (TPU lane "
                             "width) for the lane-dense per-batch layout")
        self.embed_dim = embed_dim
        self.num_heads = num_heads
        self.head_dim = embed_dim // num_heads
        self.scaling = self.head_dim ** (-0.5)
        self.dropout_prob = dropout  # only 0.0 supported (guarded in multi_attn)

        ks = jax.random.split(key, 8)

        def xavier_uniform_t(k, in_f, out_f, gain=1.0):
            # stored pre-transposed as (in_f, out_f); same xavier distribution
            bound = gain * math.sqrt(6.0 / (in_f + out_f))
            return jax.random.uniform(k, (in_f, out_f), jnp.float32, -bound, bound)

        g = 1.0 / math.sqrt(2.0)   # qkv_same_dim init gain
        E = embed_dim
        self.q_wt = xavier_uniform_t(ks[0], E, E, g)
        self.k_wt = xavier_uniform_t(ks[1], E, E, g)
        self.v_wt = xavier_uniform_t(ks[2], E, E, g)
        self.out_wt = xavier_uniform_t(ks[3], E, E, 1.0)
        bb = 1.0 / math.sqrt(E)    # nn.Linear default bias init
        if bias:
            self.q_b = jax.random.uniform(ks[4], (E,), jnp.float32, -bb, bb)
            self.k_b = jax.random.uniform(ks[5], (E,), jnp.float32, -bb, bb)
            self.v_b = jax.random.uniform(ks[6], (E,), jnp.float32, -bb, bb)
        else:
            self.q_b = self.k_b = self.v_b = jnp.zeros((E,), jnp.float32)
        self.out_b = jnp.zeros((E,), jnp.float32)  # reset_parameters: constant 0

        # Fold the softmax scale into the Q projection (free at init; removes a
        # per-step T*E VPU multiply and an f32 (T,E) temporary in-kernel).
        self.q_wt_scaled = self.q_wt * self.scaling
        self.q_b_scaled = self.q_b * self.scaling
        # Pre-fused projection weights (pre-transposed (in, out)). The fused
        # projection output is split by BlockSpec column indices, never copied.
        self.qkv_wt = jnp.concatenate([self.q_wt_scaled, self.k_wt, self.v_wt], axis=1)
        self.qkv_b = jnp.concatenate([self.q_b_scaled, self.k_b, self.v_b])
        self.kv_wt = jnp.concatenate([self.k_wt, self.v_wt], axis=1)
        self.kv_b = jnp.concatenate([self.k_b, self.v_b])

    def multi_attn(self, query, key, value, key_padding_mask, bsz, tgt_len,
                   compute_dtype=jnp.bfloat16):
        """query: (tgt_len*bsz, E); key/value: (src_len*bsz, E);
        key_padding_mask: (bsz, src_len), 1 at pad positions (or None).
        compute_dtype: matmul dtype (bf16 default, MXU-native); softmax and all
        accumulations stay f32; output is returned in query.dtype."""
        E, H, D = self.embed_dim, self.num_heads, self.head_dim
        src_len = key.shape[0] // bsz
        if self.dropout_prob != 0.0:
            # TODO(synk): attention-dropout mask application inside the kernel.
            raise NotImplementedError("dropout_prob != 0 is not supported")
        cd = compute_dtype

        self_attn = (query is key) and (key is value)
        kv_shared = key is value

        # --- projections (tiled Pallas matmuls, pre-transposed weights) ---
        if self_attn:
            # One fused (E, 3E) matmul; per-batch q/k/v slabs selected by the
            # attention BlockSpecs from the free (L, B*3E) row-major view.
            qkv = linear(query.astype(cd), self.qkv_wt.astype(cd), self.qkv_b)
            qkv3 = qkv.reshape(tgt_len, bsz * 3 * E)       # free view
            q_arr = k_arr = v_arr = qkv3
            q_cols, q_off = 3, 0
            k_cols, k_off = 3, 1
            v_cols, v_off = 3, 2
        else:
            q = linear(query.astype(cd), self.q_wt_scaled.astype(cd),
                       self.q_b_scaled)
            q_arr = q.reshape(tgt_len, bsz * E)            # free view
            q_cols, q_off = 1, 0
            if kv_shared:
                kv = linear(key.astype(cd), self.kv_wt.astype(cd), self.kv_b)
                kv2 = kv.reshape(src_len, bsz * 2 * E)     # free view
                k_arr = v_arr = kv2
                k_cols, k_off = 2, 0
                v_cols, v_off = 2, 1
            else:
                k = linear(key.astype(cd), self.k_wt.astype(cd), self.k_b)
                v = linear(value.astype(cd), self.v_wt.astype(cd), self.v_b)
                k_arr = k.reshape(src_len, bsz * E)
                v_arr = v.reshape(src_len, bsz * E)
                k_cols = v_cols = 1
                k_off = v_off = 0

        if key_padding_mask is None:
            kpm3 = None   # unmasked kernel variant: no mask DMA, no bias adds
        else:
            kpm3 = jnp.asarray(key_padding_mask).astype(jnp.float32).reshape(
                bsz, 1, src_len)

        # --- attention core + fused output projection ---
        o2 = attention_outproj(
            q_arr, k_arr, v_arr, kpm3,
            self.out_wt.astype(cd), self.out_b,
            bsz=bsz, tgt_len=tgt_len, src_len=src_len,
            num_heads=H, head_dim=D,
            q_cols=q_cols, q_off=q_off, k_cols=k_cols, k_off=k_off,
            v_cols=v_cols, v_off=v_off,
            out_dtype=query.dtype, acc_dtype=cd)

        # --- free reshape back to (tgt_len*bsz, E) ---
        return o2.reshape(tgt_len * bsz, E)


# ---------------------------------------------------------------------------
# Pure-JAX reference
# ---------------------------------------------------------------------------

def reference(mha, query, key, value, kpm, bsz, tgt_len):
    E, H, D = mha.embed_dim, mha.num_heads, mha.head_dim
    src_len = key.shape[0] // bsz
    q = query @ mha.q_wt + mha.q_b
    k = key @ mha.k_wt + mha.k_b
    v = value @ mha.v_wt + mha.v_b
    q = q.reshape(tgt_len, bsz, H, D).transpose(1, 2, 0, 3) * mha.scaling
    k = k.reshape(src_len, bsz, H, D).transpose(1, 2, 0, 3)
    v = v.reshape(src_len, bsz, H, D).transpose(1, 2, 0, 3)
    s = jnp.einsum("bhtd,bhsd->bhts", q, k)
    if kpm is not None:
        s = jnp.where(kpm[:, None, None, :].astype(bool), -jnp.inf, s)
    p = jax.nn.softmax(s, axis=-1)
    o = jnp.einsum("bhts,bhsd->bhtd", p, v)
    o = o.transpose(2, 0, 1, 3).reshape(tgt_len * bsz, E)
    return o @ mha.out_wt + mha.out_b


# ---------------------------------------------------------------------------

if __name__ == "__main__":
    key0 = jax.random.PRNGKey(0)
    k_param, k_q, k_k, k_v = jax.random.split(key0, 4)

    embed_dim, num_heads = 128, 4          # E multiple of 128 -> lane-dense blocks
    bsz, tgt_len, src_len = 2, 8, 8

    mha = MultiheadAttentionPallas(embed_dim, num_heads, k_param, dropout=0.0)

    # Inputs in the fused op's flattened (time*batch, channel) layout.
    query = jax.random.normal(k_q, (tgt_len * bsz, embed_dim), jnp.float32)
    key = jax.random.normal(k_k, (src_len * bsz, embed_dim), jnp.float32)
    value = jax.random.normal(k_v, (src_len * bsz, embed_dim), jnp.float32)

    # key_padding_mask: 1 marks padded key positions (last 2 keys of batch 1).
    kpm = jnp.zeros((bsz, src_len), jnp.float32).at[1, -2:].set(1.0)

    # --- cross-attention (separate projections), masked, f32 compute ---
    ref = reference(mha, query, key, value, kpm, bsz, tgt_len)
    out = jax.block_until_ready(
        mha.multi_attn(query, key, value, kpm, bsz, tgt_len,
                       compute_dtype=jnp.float32))
    assert out.shape == (tgt_len * bsz, embed_dim)
    assert jnp.allclose(out, ref, atol=1e-2, rtol=1e-2), "f32 cross-attn mismatch"

    # --- default bf16 compute (MXU-native matmuls, f32 softmax/accum) ---
    out_bf16 = jax.block_until_ready(
        mha.multi_attn(query, key, value, kpm, bsz, tgt_len))
    assert jnp.allclose(out_bf16.astype(jnp.float32), ref,
                        atol=2e-1, rtol=2e-1), "bf16 mismatch vs reference"

    # --- self-attention: fused (E,3E) QKV projection, unmasked kernel ---
    ref_sa = reference(mha, query, query, query, None, bsz, tgt_len)
    out_sa = jax.block_until_ready(
        mha.multi_attn(query, query, query, None, bsz, tgt_len,
                       compute_dtype=jnp.float32))
    assert jnp.allclose(out_sa, ref_sa, atol=1e-2, rtol=1e-2), "self-attn mismatch"

    # --- shared key/value: fused (E,2E) KV projection, masked ---
    ref_kv = reference(mha, query, key, key, kpm, bsz, tgt_len)
    out_kv = jax.block_until_ready(
        mha.multi_attn(query, key, key, kpm, bsz, tgt_len,
                       compute_dtype=jnp.float32))
    assert jnp.allclose(out_kv, ref_kv, atol=1e-2, rtol=1e-2), "shared-kv mismatch"

    print("KERNEL_OK")
</pallas_src>

<mosaic_0001>
module attributes {stable_mosaic.version = 11 : i64} {
  func.func @_linear_kernel(%arg0: i32, %arg1: i32, %arg2: memref<16x128xf32, #tpu.memory_space<vmem>>, %arg3: memref<128x128xf32, #tpu.memory_space<vmem>>, %arg4: memref<1x128xf32, #tpu.memory_space<vmem>>, %arg5: memref<16x128xf32, #tpu.memory_space<vmem>>) attributes {dimension_semantics = [#tpu.dimension_semantics<parallel>, #tpu.dimension_semantics<parallel>], iteration_bounds = array<i64: 1, 1>, scalar_prefetch = 0 : i64, scratch_operands = 0 : i64, tpu.core_type = #tpu.core_type<tc>, window_params = [{transform_indices = @transform_0, window_bounds = array<i64: 16, 128>}, {transform_indices = @transform_1, window_bounds = array<i64: 128, 128>}, {transform_indices = @transform_2, window_bounds = array<i64: 1, 128>}, {transform_indices = @transform_3, window_bounds = array<i64: 16, 128>}]} {
    %c0 = arith.constant 0 : index
    %c0_0 = arith.constant 0 : index
    %0 = vector.load %arg2[%c0, %c0_0] : memref<16x128xf32, #tpu.memory_space<vmem>>, vector<16x128xf32>
    %c0_1 = arith.constant 0 : index
    %c0_2 = arith.constant 0 : index
    %1 = vector.load %arg3[%c0_1, %c0_2] : memref<128x128xf32, #tpu.memory_space<vmem>>, vector<128x128xf32>
    %cst = arith.constant dense<0.000000e+00> : vector<16x128xf32>
    %2 = tpu.matmul %0, %1, %cst {dimension_numbers = #tpu.dot_dimension_numbers<[1], [0], [0], [1], [0, 0, 1, 1], [], []>} : vector<16x128xf32>, vector<128x128xf32>, vector<16x128xf32> -> vector<16x128xf32>
    %c0_3 = arith.constant 0 : index
    %c0_4 = arith.constant 0 : index
    %3 = vector.load %arg4[%c0_3, %c0_4] : memref<1x128xf32, #tpu.memory_space<vmem>>, vector<1x128xf32>
    %4 = vector.broadcast %3 : vector<1x128xf32> to vector<16x128xf32>
    %5 = arith.addf %2, %4 : vector<16x128xf32>
    %c0_5 = arith.constant 0 : index
    %c0_6 = arith.constant 0 : index
    %6 = vector.load %arg5[%c0_5, %c0_6] : memref<16x128xf32, #tpu.memory_space<vmem>>, vector<16x128xf32>
    tpu.vector_store %arg5[%c0_5, %c0_6], %5 {strides = array<i32>} : memref<16x128xf32, #tpu.memory_space<vmem>>, vector<16x128xf32>,
    return
  }
  func.func @transform_0(%arg0: i32, %arg1: i32) -> (i32, i32) {
    %c0_i32 = arith.constant 0 : i32
    %c0_i32_0 = arith.constant 0 : i32
    return %arg1, %c0_i32 : i32, i32
  }
  func.func @transform_1(%arg0: i32, %arg1: i32) -> (i32, i32) {
    %c0_i32 = arith.constant 0 : i32
    %c0_i32_0 = arith.constant 0 : i32
    return %c0_i32, %arg0 : i32, i32
  }
  func.func @transform_2(%arg0: i32, %arg1: i32) -> (i32, i32) {
    %c0_i32 = arith.constant 0 : i32
    %c0_i32_0 = arith.constant 0 : i32
    return %c0_i32, %arg0 : i32, i32
  }
  func.func @transform_3(%arg0: i32, %arg1: i32) -> (i32, i32) {
    %c0_i32 = arith.constant 0 : i32
    return %arg1, %arg0 : i32, i32
  }
}

</mosaic_0001>

<bundles_post_ra>
// kernel: tpu_custom_call.1
= control target key start
LH: loop header
LB: loop body
LE: loop exit
PB: predicated region body
PF: predicated region fallthrough
CT: control target
= control target key end

     0   :  { %8 = vsyncpa [#allocation3], 0  ;;  %s399_s0 = inlined_call_operand.hbm [shape: f32[16,128], index: 0, kind: input, shape index: {}]   ;;  %s400_s1 = inlined_call_operand.hbm [shape: f32[128,128], index: 1, kind: input, shape index: {}]   ;;  %s401_s2 = inlined_call_operand.vmem [shape: f32[1,128], index: 2, kind: input, shape index: {}]   ;;  %s402_s3 = inlined_call_operand.hbm [shape: f32[16,128], index: 3, kind: output, shape index: {}]  }
   0x1   :  { %9 = vsyncpa [#allocation6], 0 }
   0x2   :  { %10 = vsyncpa [#allocation4], 0  ;;  %s326_s12 = smov [#allocation2]   ;;  %s254_s16 = scalar_lea.hbm %s399_s0, 256 }
   0x3   :  { %s16_s13 = sshll.u32 %s326_s12, 4  ;;  %p255_p0 = scmp.ne.s32.totalorder %s399_s0, %s254_s16  ;;  %s17_s13 = int_to_ptr.vmem [resolvable:$true] %s16_s13 }
   0x4   :  { %p258_p1 = scmp.lt.u32.totalorder %s254_s16, %s399_s0 }
   0x6   :  { %p260_p2 = pnand %p258_p1, %p255_p0 }
   0x8   :  { %263 = shalt.err (!%p260_p2)
}
   0x9   :  { %s264_s21 = scalar_lea.vmem %s17_s13, 256  ;;  %p269_p4 = scmp.lt.s32.totalorder %s17_s13, %s17_s13 }
   0xa   :  { %p265_p3 = scmp.ne.s32.totalorder %s17_s13, %s264_s21  ;;  %p270_p5 = scmp.lt.s32.totalorder %s264_s21, %s264_s21 }
   0xc   :  { %p271_p6 = por %p270_p5, %p269_p4 }
   0xe   :  { %p272_p7 = pnand %p271_p6, %p265_p3 }
  0x10   :  { %275 = shalt.err (!%p272_p7)
}
  0x11   :  { %s327_s22 = smov 128   ;;  %s328_s23 = smov 8  }
  0x12   :  { %22 = dma.hbm_to_vmem [thread:$0]  %s399_s0, 256, %s17_s13, [#allocation3], %s327_s22, %s327_s22, %s328_s23  }
  0x13   :  { %s329_s26 = smov [#allocation5]   ;;  %s276_s30 = scalar_lea.hbm %s400_s1, 2048 }
  0x14   :  { %s28_s27 = sshll.u32 %s329_s26, 4  ;;  %p277_p8 = scmp.ne.s32.totalorder %s400_s1, %s276_s30  ;;  %s29_s27 = int_to_ptr.vmem [resolvable:$true] %s28_s27 }
  0x15   :  { %p280_p9 = scmp.lt.u32.totalorder %s276_s30, %s400_s1 }
  0x17   :  { %p282_p10 = pnand %p280_p9, %p277_p8 }
  0x19   :  { %285 = shalt.err (!%p282_p10)
}
  0x1a   :  { %s286_s8 = scalar_lea.vmem %s29_s27, 2048  ;;  %p291_p12 = scmp.lt.s32.totalorder %s29_s27, %s29_s27 }
  0x1b   :  { %p287_p11 = scmp.ne.s32.totalorder %s29_s27, %s286_s8  ;;  %p292_p13 = scmp.lt.s32.totalorder %s286_s8, %s286_s8 }
  0x1d   :  { %p293_p0 = por %p292_p13, %p291_p12 }
  0x1f   :  { %p294_p1 = pnand %p293_p0, %p287_p11 }
  0x21   :  { %297 = shalt.err (!%p294_p1)
}
  0x22   :  { %34 = dma.hbm_to_vmem [thread:$0]  %s400_s1, 2048, %s29_s27, [#allocation6], %s327_s22, %s327_s22, %s328_s23  }
  0x23   :  { %320 = dma.done.wait [#allocation3], 256  }
  0x24   :  { %321 = vsyncadd [#allocation3], 4294967040 }
  0x25   :  { %322 = dma.done.wait [#allocation6], 2048  }
  0x26   :  { %323 = vsyncadd [#allocation6], 4294965248  ;;  %v45_v0 = vld [vmem:[#allocation5] sm:$0xff]  ;;  %v46_v1 = vld [vmem:[#allocation5 + $0x8] sm:$0xff]  ;;  %s330_s11 = smov [#allocation7]  }
  0x27   :  { %v47_v2 = vld [vmem:[#allocation5 + $0x10] sm:$0xff]  ;;  %v217_v3 = vpack.c.bf16 %v46_v1, %v45_v0  ;;  %v48_v4 = vld [vmem:[#allocation5 + $0x18] sm:$0xff]  ;;  %v49_v6 = vld [vmem:[#allocation5 + $0x20] sm:$0xff]  ;;  %s150_s12 = sshll.u32 %s330_s11, 4  ;;  %s151_s12 = int_to_ptr.vmem [resolvable:$true] %s150_s12 }
  0x28   :  { %v221_v5 = vpack.c.bf16 %v48_v4, %v47_v2  ;;  %v50_v7 = vld [vmem:[#allocation5 + $0x28] sm:$0xff]  ;;  %v43_v9 = vld [vmem:[#allocation2] sm:$0xff]  ;;  %v52_v11 = vld [vmem:[#allocation5 + $0x38] sm:$0xff]  ;;  %s298_s13 = scalar_lea.vmem %s151_s12, 256  ;;  %p303_p3 = scmp.lt.s32.totalorder %s151_s12, %s151_s12 }
  0x29   :  { %218 = vmatprep.subr.bf16.mxu0 %v217_v3  ;;  %v225_v8 = vpack.c.bf16 %v50_v7, %v49_v6  ;;  %v51_v10 = vld [vmem:[#allocation5 + $0x30] sm:$0xff]  ;;  %214 = vmatprep.mubr.f32.mxu0 %v43_v9  ;;  %v53_v13 = vld [vmem:[#allocation5 + $0x40] sm:$0xff]  ;;  %v54_v14 = vld [vmem:[#allocation5 + $0x48] sm:$0xff]  ;;  %p299_p2 = scmp.ne.s32.totalorder %s151_s12, %s298_s13  ;;  %p304_p4 = scmp.lt.s32.totalorder %s298_s13, %s298_s13 }
  0x2a   :  { %220 = vmatpush3.bf16.msra.mxu0 %v217_v3  ;;  %v229_v12 = vpack.c.bf16 %v52_v11, %v51_v10  ;;  %v233_v15 = vpack.c.bf16 %v54_v14, %v53_v13  ;;  %v55_v16 = vld [vmem:[#allocation5 + $0x50] sm:$0xff]  ;;  %v56_v17 = vld [vmem:[#allocation5 + $0x58] sm:$0xff]  ;;  %v57_v19 = vld [vmem:[#allocation5 + $0x60] sm:$0xff] }
  0x2b   :  { %222 = vmatprep.subr.bf16.mxu0 %v221_v5  ;;  %v237_v18 = vpack.c.bf16 %v56_v17, %v55_v16  ;;  %v58_v20 = vld [vmem:[#allocation5 + $0x68] sm:$0xff]  ;;  %v59_v22 = vld [vmem:[#allocation5 + $0x70] sm:$0xff]  ;;  %v60_v23 = vld [vmem:[#allocation5 + $0x78] sm:$0xff]  ;;  %p305_p5 = por %p304_p4, %p303_p3 }
  0x2c   :  { %v241_v21 = vpack.c.bf16 %v58_v20, %v57_v19  ;;  %v245_v24 = vpack.c.bf16 %v60_v23, %v59_v22  ;;  %v44_v25 = vld [vmem:[#allocation2 + $0x8] sm:$0xff]  ;;  %v163_v26 = vld [vmem:[%s401_s2] ss:$0 sm:$0xff] }
  0x2d   :  { %p306_p6 = pnand %p305_p5, %p299_p2 }
  0x2e   :  { %224 = vmatpush3.bf16.msra.mxu0 %v221_v5 }
  0x2f   :  { %226 = vmatprep.subr.bf16.mxu0 %v225_v8 }
  0x32   :  { %228 = vmatpush3.bf16.msra.mxu0 %v225_v8 }
  0x33   :  { %230 = vmatprep.subr.bf16.mxu0 %v229_v12 }
  0x36   :  { %232 = vmatpush3.bf16.msra.mxu0 %v229_v12 }
  0x37   :  { %234 = vmatprep.subr.bf16.mxu0 %v233_v15 }
  0x3a   :  { %236 = vmatpush3.bf16.msra.mxu0 %v233_v15 }
  0x3b   :  { %238 = vmatprep.subr.bf16.mxu0 %v237_v18 }
  0x3e   :  { %240 = vmatpush3.bf16.msra.mxu0 %v237_v18 }
  0x3f   :  { %242 = vmatprep.subr.bf16.mxu0 %v241_v21 }
  0x42   :  { %244 = vmatpush3.bf16.msra.mxu0 %v241_v21 }
  0x43   :  { %246 = vmatprep.subr.bf16.mxu0 %v245_v24 }
  0x46   :  { %248 = vmatpush3.bf16.msra.mxu0 %v245_v24 }
  0x49   :  { %215 = vmatmul.mubr.f32.vlgmr.msra.gmra.mrb[0].mxu0 %v44_v25 }
 0x11c   :  { %v216_v27 = vpop.f32.mrb[0].mxu0 }
 0x11d   :  { %v140_v28 = vadd.f32 %v216_v27, %v163_v26  ;;  %v134_v29 = vpop.f32.mrb[1].mxu0 }
 0x11e   :  { %v135_v30 = vadd.f32 %v163_v26, %v134_v29 }
 0x11f   :  { %144 = vst [vmem:[#allocation7 + $0x8] sm:$0xff] %v140_v28 }
 0x120   :  { %143 = vst [vmem:[#allocation7] sm:$0xff] %v135_v30 }
 0x121   :  { %309 = shalt.err (!%p306_p6)
}
 0x122   :  { %s310_s2 = scalar_lea.hbm %s402_s3, 256 }
 0x123   :  { %p311_p7 = scmp.ne.s32.totalorder %s402_s3, %s310_s2  ;;  %p314_p8 = scmp.lt.u32.totalorder %s310_s2, %s402_s3 }
 0x125   :  { %p316_p9 = pnand %p314_p8, %p311_p7 }
 0x127   :  { %319 = shalt.err (!%p316_p9)
}
 0x128   :  { %156 = dma.vmem_to_hbm [thread:$0]  %s151_s12, 256, %s402_s3, [#allocation4], %s327_s22, %s327_s22, %s328_s23  }
 0x129   :  { %324 = dma.done.wait [#allocation4], 256  }
 0x12a   :  { %325 = vsyncadd [#allocation4], 4294967040 }
 0x12b   :  { %160 = vsyncpa [#allocation3], 1 }
 0x12c   :  { %161 = vsyncpa [#allocation6], 1 }
 0x12d   :  { %162 = vsyncpa [#allocation4], 1 }

</bundles_post_ra>
